<compile_context>
chip_gen: v7x
topology: tpu7x:2x2x1
jax: 0.10.0
libtpu: 0.0.40
codegen_flags: <defaults>
</compile_context>

<pallas_src>
import numpy as np
import jax
import jax.numpy as jnp
from jax.experimental import pallas as pl
from jax.experimental.pallas import tpu as pltpu

N_INT = 100            # recurrent_integrate default N
H_INT = 1.0 / N_INT    # integration step h = (b - a) / N, with b - a == 1

MP = 8                 # sublane-padded number of quadrature rows (5 active)
TP = 128               # lane width of each table slab / batch tile


# ---------------------------------------------------------------------------
# Host-side constant table (built once at import): (8, 384) = [ U | WT0 | WT1 ]
#   row m holds the 100 abscissae of one integral, zero-padded to 128 lanes.
#   WT0 / WT1 hold the *signed* quadrature weights of the integrals that feed
#   coefficient c0 = Q(1,1)+Q(1,2)  and  c1 = Q(2,1)-V(2,1)+V(2,2).
# Row layout (v, n):  0: Q(1,1)  1: Q(1,2)             -> c0   (v = 1)
#                     2: Q(2,1)  3: -V(2,1)  4: V(2,2) -> c1   (v = 2)
#                     5-7: all-zero weights (padding)
# (the kernel reconstructs v from the row index: rows 0-1 -> v=1, others v=2)
# recurrent_integrate(fun, n, n+1) evaluates fun(n + i, h) for i in
# linspace(n, n+1, N), so u = n + i and the V weight is (u - n)*h = i*h.
# ---------------------------------------------------------------------------
def _build_table():
    U = np.zeros((MP, TP), np.float64)
    W0 = np.zeros((MP, TP), np.float64)
    W1 = np.zeros((MP, TP), np.float64)
    rows = [
        # (v, n, is_V, sign, which_coefficient)
        (1, 1, False, +1.0, 0),   # Q(1,1) -> c0
        (1, 2, False, +1.0, 0),   # Q(1,2) -> c0
        (2, 1, False, +1.0, 1),   # Q(2,1) -> c1
        (2, 1, True,  -1.0, 1),   # V(2,1) -> c1 (minus sign baked into weight)
        (2, 2, True,  +1.0, 1),   # V(2,2) -> c1
    ]
    for m, (_v, n, is_v, sign, which) in enumerate(rows):
        i_pts = np.linspace(n, n + 1, N_INT)
        U[m, :N_INT] = n + i_pts                              # u = a + i
        wt = (i_pts * H_INT) if is_v else np.full(N_INT, H_INT)
        (W0 if which == 0 else W1)[m, :N_INT] = sign * wt
    return np.concatenate([U, W0, W1], axis=1).astype(np.float32)


_TABLE = _build_table()   # numpy constant; becomes a jit-time constant below


def recurrent_fused_kernel(params_ref, tab_ref, xt_ref, y_ref):
    """Fused forward: 5 quadratures -> (c0, c1) -> y = c0*x[:,0] + c1*x[:,1].

    params_ref : SMEM (9,)   f32  [s0, s1, s2, w00, w01, w10, w11, p0, p1]
    tab_ref    : VMEM (8, 384)    [u | wt_c0 | wt_c1]        (constant)
    xt_ref     : VMEM (8, TP)     x^T tile: sublane = feature, lane = batch
    y_ref      : VMEM (1, TP)     lane-dense output tile, lane b = y[b]
    """
    # Scalar parameters (SMEM -> sregs); fold the h_int factor once.
    s0 = params_ref[0]
    s1h = params_ref[1] * H_INT
    s2h = params_ref[2] * H_INT
    w00, w01 = params_ref[3], params_ref[4]
    w10, w11 = params_ref[5], params_ref[6]
    p0, p1 = params_ref[7], params_ref[8]

    u = tab_ref[:, 0 * TP:1 * TP]          # (8,128) abscissae
    wt0 = tab_ref[:, 1 * TP:2 * TP]        # signed quadrature weights -> c0
    wt1 = tab_ref[:, 2 * TP:3 * TP]        # signed quadrature weights -> c1

    # Per-row v of the integrand: rows 0-1 integrate at v=1, rows 2-4 at v=2
    # (rows 5-7 have all-zero weights, so their value is irrelevant).
    row = jax.lax.broadcasted_iota(jnp.int32, (MP, 1), 0)
    v = jnp.where(row < 2, 1.0, 2.0)                          # (8,1) f32

    # recurrent_kernel(u, v) = s0 + (s1*cos(w00 u + w01 v - p0)
    #                              + s2*cos(w10 u + w11 v - p1)) * h_int
    # Two EUP cos pushes on an (8,128) tile; everything else is VPU filler.
    k = (s0
         + s1h * jnp.cos(w00 * u + (w01 * v - p0))
         + s2h * jnp.cos(w10 * u + (w11 * v - p1)))           # (8,128)

    # Wc column-sums as (1,1) values: lane reduce then sublane reduce (XLU).
    c0 = jnp.sum(jnp.sum(k * wt0, axis=1, keepdims=True), axis=0, keepdims=True)
    c1 = jnp.sum(jnp.sum(k * wt1, axis=1, keepdims=True), axis=0, keepdims=True)

    # y = x @ Wc.sum(axis=1); the third column-sum is exactly 0, so x[:,2]
    # contributes nothing (Wc's last row is structurally zero).
    y_ref[...] = c0 * xt_ref[0:1, :] + c1 * xt_ref[1:2, :]    # (1,128) VPU


def recurrent_model_forward(x, s, w, p):
    """y = (x @ recurrent_W(3, s, w, p, 0.1)).sum(1);  x: (B, 3) -> (B,)."""
    B = x.shape[0]
    b_pad = pl.cdiv(B, TP) * TP
    n_blk = b_pad // TP

    # One flat scalar-parameter block (single small SMEM transfer).
    params = jnp.concatenate(
        [s.reshape(-1), w.reshape(-1), p.reshape(-1)]).astype(jnp.float32)
    tab = jnp.asarray(_TABLE)                     # (8, 384) jit-time constant

    # Lane-dense layout: features on sublanes, batch on lanes (zero padded).
    xt = jnp.zeros((MP, b_pad), jnp.float32).at[:3, :B].set(
        x.astype(jnp.float32).T)

    y_pad = pl.pallas_call(
        recurrent_fused_kernel,
        out_shape=jax.ShapeDtypeStruct((1, b_pad), jnp.float32),
        grid=(n_blk,),                            # batch-lane tiles (1 at B=8)
        in_specs=[
            pl.BlockSpec(memory_space=pltpu.MemorySpace.SMEM),   # params
            pl.BlockSpec((MP, 3 * TP), lambda i: (0, 0)),        # table
            pl.BlockSpec((MP, TP), lambda i: (0, i)),            # x^T tile
        ],
        out_specs=pl.BlockSpec((1, TP), lambda i: (0, i)),
        compiler_params=pltpu.CompilerParams(
            dimension_semantics=("parallel",)),
    )(params, tab, xt)
    return y_pad[0, :B]


def _reference_forward_np(x, s, w, p):
    """Pure numpy (float64) re-implementation of the literal PyTorch forward."""
    s = np.asarray(s, np.float64)
    wm = np.asarray(w, np.float64)
    pv = np.asarray(p, np.float64)

    def kernel(u, v):
        uv = np.array([u, v], np.float64)
        return s[0] + np.dot(np.cos(wm @ uv - pv), s[1:]) * H_INT

    def Q(v, n):
        return sum(kernel(n + i, v) * H_INT for i in np.linspace(n, n + 1, N_INT))

    def Vf(v, n):
        return sum(kernel(n + i, v) * ((n + i) - n) * H_INT
                   for i in np.linspace(n, n + 1, N_INT))

    W = np.zeros((3, 3), np.float64)
    W[0, 0] = Q(1, 1) - Vf(1, 1)
    W[0, 1] = Q(2, 1) - Vf(2, 1)
    W[1, 0] = Q(1, 2) - Vf(1, 2) + Vf(1, 1)
    W[2, 0] = Vf(1, 2)
    W[2, 1] = Vf(2, 2)
    Wc = W.T
    return (np.asarray(x, np.float64) @ Wc).sum(1)


if __name__ == "__main__":
    key = jax.random.PRNGKey(0)
    kw, kp, kx = jax.random.split(key, 3)

    # Parameters mirroring RecurrentModel.__init__ shapes/ranges.
    s = jnp.array([1e-5, 1.0, 1.0], dtype=jnp.float32)
    w = jax.random.uniform(kw, (2, 2), minval=-1e-5, maxval=1e-5, dtype=jnp.float32)
    p = jax.random.uniform(kp, (2,), minval=-1e-5, maxval=1e-5, dtype=jnp.float32)
    # TODO(synk): self.linear = nn.Linear(input_size, output_size) is created
    # in __init__ but never used in forward(), so it is intentionally omitted.

    B = 8
    x = jax.random.normal(kx, (B, 3), dtype=jnp.float32)

    fwd = jax.jit(recurrent_model_forward)
    y = jax.block_until_ready(fwd(x, s, w, p))

    y_ref = _reference_forward_np(x, s, w, p)
    np.testing.assert_allclose(np.asarray(y, np.float64), y_ref, rtol=1e-4, atol=1e-5)

    print("KERNEL_OK")
</pallas_src>

<mosaic_0001>
module attributes {stable_mosaic.version = 11 : i64} {
  func.func @recurrent_fused_kernel(%arg0: i32, %arg1: memref<9xf32, #tpu.memory_space<smem>>, %arg2: memref<8x384xf32, #tpu.memory_space<vmem>>, %arg3: memref<8x128xf32, #tpu.memory_space<vmem>>, %arg4: memref<1x128xf32, #tpu.memory_space<vmem>>) attributes {dimension_semantics = [#tpu.dimension_semantics<parallel>], iteration_bounds = array<i64: 1>, scalar_prefetch = 0 : i64, scratch_operands = 0 : i64, tpu.core_type = #tpu.core_type<tc>, window_params = [{transform_indices = @transform_0, window_bounds = array<i64: 9>}, {pipeline_mode = #tpu.pipeline_mode<synchronous>, transform_indices = @transform_1, window_bounds = array<i64: 8, 384>}, {transform_indices = @transform_2, window_bounds = array<i64: 8, 128>}, {transform_indices = @transform_3, window_bounds = array<i64: 1, 128>}]} {
    %c0 = arith.constant 0 : index
    %0 = memref.load %arg1[%c0] : memref<9xf32, #tpu.memory_space<smem>>
    %c1 = arith.constant 1 : index
    %1 = memref.load %arg1[%c1] : memref<9xf32, #tpu.memory_space<smem>>
    %cst = arith.constant 0.00999999977 : f32
    %2 = arith.mulf %1, %cst : f32
    %c2 = arith.constant 2 : index
    %3 = memref.load %arg1[%c2] : memref<9xf32, #tpu.memory_space<smem>>
    %cst_0 = arith.constant 0.00999999977 : f32
    %4 = arith.mulf %3, %cst_0 : f32
    %c3 = arith.constant 3 : index
    %5 = memref.load %arg1[%c3] : memref<9xf32, #tpu.memory_space<smem>>
    %c4 = arith.constant 4 : index
    %6 = memref.load %arg1[%c4] : memref<9xf32, #tpu.memory_space<smem>>
    %c5 = arith.constant 5 : index
    %7 = memref.load %arg1[%c5] : memref<9xf32, #tpu.memory_space<smem>>
    %c6 = arith.constant 6 : index
    %8 = memref.load %arg1[%c6] : memref<9xf32, #tpu.memory_space<smem>>
    %c7 = arith.constant 7 : index
    %9 = memref.load %arg1[%c7] : memref<9xf32, #tpu.memory_space<smem>>
    %c8 = arith.constant 8 : index
    %10 = memref.load %arg1[%c8] : memref<9xf32, #tpu.memory_space<smem>>
    %c0_1 = arith.constant 0 : index
    %c0_2 = arith.constant 0 : index
    %11 = vector.load %arg2[%c0_1, %c0_2] : memref<8x384xf32, #tpu.memory_space<vmem>>, vector<8x128xf32>
    %c0_3 = arith.constant 0 : index
    %c128 = arith.constant 128 : index
    %12 = vector.load %arg2[%c0_3, %c128] : memref<8x384xf32, #tpu.memory_space<vmem>>, vector<8x128xf32>
    %c0_4 = arith.constant 0 : index
    %c256 = arith.constant 256 : index
    %13 = vector.load %arg2[%c0_4, %c256] : memref<8x384xf32, #tpu.memory_space<vmem>>, vector<8x128xf32>
    %14 = tpu.iota {dimensions = array<i32: 0>} : vector<8x1xi32>
    %c2_i32 = arith.constant 2 : i32
    %15 = vector.broadcast %c2_i32 : i32 to vector<8x1xi32>
    %16 = arith.cmpi slt, %14, %15 : vector<8x1xi32>
    %cst_5 = arith.constant 1.000000e+00 : f32
    %cst_6 = arith.constant 2.000000e+00 : f32
    %17 = vector.broadcast %cst_5 : f32 to vector<8x1xf32>
    %18 = vector.broadcast %cst_6 : f32 to vector<8x1xf32>
    %19 = arith.select %16, %17, %18 : vector<8x1xi1>, vector<8x1xf32>
    %20 = vector.broadcast %5 : f32 to vector<8x128xf32>
    %21 = arith.mulf %20, %11 : vector<8x128xf32>
    %22 = vector.broadcast %6 : f32 to vector<8x1xf32>
    %23 = arith.mulf %22, %19 : vector<8x1xf32>
    %24 = vector.broadcast %9 : f32 to vector<8x1xf32>
    %25 = arith.subf %23, %24 : vector<8x1xf32>
    %26 = vector.broadcast %25 : vector<8x1xf32> to vector<8x128xf32>
    %27 = arith.addf %21, %26 : vector<8x128xf32>
    %28 = math.cos %27 : vector<8x128xf32>
    %29 = vector.broadcast %2 : f32 to vector<8x128xf32>
    %30 = arith.mulf %29, %28 : vector<8x128xf32>
    %31 = vector.broadcast %0 : f32 to vector<8x128xf32>
    %32 = arith.addf %31, %30 : vector<8x128xf32>
    %33 = vector.broadcast %7 : f32 to vector<8x128xf32>
    %34 = arith.mulf %33, %11 : vector<8x128xf32>
    %35 = vector.broadcast %8 : f32 to vector<8x1xf32>
    %36 = arith.mulf %35, %19 : vector<8x1xf32>
    %37 = vector.broadcast %10 : f32 to vector<8x1xf32>
    %38 = arith.subf %36, %37 : vector<8x1xf32>
    %39 = vector.broadcast %38 : vector<8x1xf32> to vector<8x128xf32>
    %40 = arith.addf %34, %39 : vector<8x128xf32>
    %41 = math.cos %40 : vector<8x128xf32>
    %42 = vector.broadcast %4 : f32 to vector<8x128xf32>
    %43 = arith.mulf %42, %41 : vector<8x128xf32>
    %44 = arith.addf %32, %43 : vector<8x128xf32>
    %45 = arith.mulf %44, %12 : vector<8x128xf32>
    %cst_7 = arith.constant dense<0.000000e+00> : vector<8xf32>
    %46 = vector.multi_reduction <add>, %45, %cst_7 [1] : vector<8x128xf32> to vector<8xf32>
    %47 = vector.shape_cast %46 : vector<8xf32> to vector<8x1xf32>
    %cst_8 = arith.constant dense<0.000000e+00> : vector<1xf32>
    %48 = vector.multi_reduction <add>, %47, %cst_8 [0] : vector<8x1xf32> to vector<1xf32>
    %49 = vector.shape_cast %48 : vector<1xf32> to vector<1x1xf32>
    %50 = arith.mulf %44, %13 : vector<8x128xf32>
    %cst_9 = arith.constant dense<0.000000e+00> : vector<8xf32>
    %51 = vector.multi_reduction <add>, %50, %cst_9 [1] : vector<8x128xf32> to vector<8xf32>
    %52 = vector.shape_cast %51 : vector<8xf32> to vector<8x1xf32>
    %cst_10 = arith.constant dense<0.000000e+00> : vector<1xf32>
    %53 = vector.multi_reduction <add>, %52, %cst_10 [0] : vector<8x1xf32> to vector<1xf32>
    %54 = vector.shape_cast %53 : vector<1xf32> to vector<1x1xf32>
    %c0_11 = arith.constant 0 : index
    %c0_12 = arith.constant 0 : index
    %55 = vector.load %arg3[%c0_11, %c0_12] : memref<8x128xf32, #tpu.memory_space<vmem>>, vector<1x128xf32>
    %56 = vector.broadcast %49 : vector<1x1xf32> to vector<1x128xf32>
    %57 = arith.mulf %56, %55 : vector<1x128xf32>
    %c1_13 = arith.constant 1 : index
    %c0_14 = arith.constant 0 : index
    %58 = vector.load %arg3[%c1_13, %c0_14] : memref<8x128xf32, #tpu.memory_space<vmem>>, vector<1x128xf32>
    %59 = vector.broadcast %54 : vector<1x1xf32> to vector<1x128xf32>
    %60 = arith.mulf %59, %58 : vector<1x128xf32>
    %61 = arith.addf %57, %60 : vector<1x128xf32>
    %c0_15 = arith.constant 0 : index
    %c0_16 = arith.constant 0 : index
    %62 = vector.load %arg4[%c0_15, %c0_16] : memref<1x128xf32, #tpu.memory_space<vmem>>, vector<1x128xf32>
    tpu.vector_store %arg4[%c0_15, %c0_16], %61 {strides = array<i32>} : memref<1x128xf32, #tpu.memory_space<vmem>>, vector<1x128xf32>,
    return
  }
  func.func @transform_0(%arg0: i32) -> i32 {
    %c0_i32 = arith.constant 0 : i32
    %c0_i32_0 = arith.constant 0 : i32
    return %c0_i32 : i32
  }
  func.func @transform_1(%arg0: i32) -> (i32, i32) {
    %c0_i32 = arith.constant 0 : i32
    %c0_i32_0 = arith.constant 0 : i32
    %c0_i32_1 = arith.constant 0 : i32
    return %c0_i32, %c0_i32_0 : i32, i32
  }
  func.func @transform_2(%arg0: i32) -> (i32, i32) {
    %c0_i32 = arith.constant 0 : i32
    %c0_i32_0 = arith.constant 0 : i32
    return %c0_i32, %arg0 : i32, i32
  }
  func.func @transform_3(%arg0: i32) -> (i32, i32) {
    %c0_i32 = arith.constant 0 : i32
    %c0_i32_0 = arith.constant 0 : i32
    return %c0_i32, %arg0 : i32, i32
  }
}

</mosaic_0001>

<bundles_post_ra>
// kernel: recurrent_model_forward.1
= control target key start
LH: loop header
LB: loop body
LE: loop exit
PB: predicated region body
PF: predicated region fallthrough
CT: control target
= control target key end

     0   :  { %8 = vsyncpa [#allocation3], 0  ;;  %s490_s0 = inlined_call_operand.vmem [shape: f32[9], index: 0, kind: input, shape index: {}]   ;;  %s491_s1 = inlined_call_operand.vmem [shape: f32[8,384], index: 1, kind: input, shape index: {}]   ;;  %s492_s2 = inlined_call_operand.vmem [shape: f32[8,128], index: 2, kind: input, shape index: {}]   ;;  %s493_s3 = inlined_call_operand.vmem [shape: f32[1,128], index: 3, kind: output, shape index: {}]  }
   0x1   :  { %s15_s14 = sshll.u32 %s490_s0, 4  ;;  %s16_s14 = int_to_ptr.vmem [resolvable:$true] %s15_s14 }
   0x2   :  { %s341_s15 = scalar_lea.vmem %s16_s14, 16  ;;  %p346_p1 = scmp.lt.s32.totalorder %s16_s14, %s16_s14 }
   0x3   :  { %p342_p0 = scmp.ne.s32.totalorder %s16_s14, %s341_s15  ;;  %p347_p2 = scmp.lt.s32.totalorder %s341_s15, %s341_s15 }
   0x5   :  { %p348_p3 = por %p347_p2, %p346_p1 }
   0x7   :  { %p349_p4 = pnand %p348_p3, %p342_p0 }
   0x9   :  { %352 = shalt.err (!%p349_p4)
}
   0xa   :  { %s355_s16 = smov [#allocation2]  }
   0xb   :  { %18 = dma.vmem_to_smem %s16_s14, 16, %s355_s16, [#allocation3]  }
   0xc   :  { %353 = dma.done.wait [#allocation3], 16  }
   0xd   :  { %354 = vsyncadd [#allocation3], 4294967280 }
   0xe   :  { %26 = sfence }
   0xf   :  { %v41_v0 = vlaneseq  ;;  %s303_s17 = sld [smem:[#allocation2 + $0x3]]  ;;  %s304_s18 = sld [smem:[#allocation2 + $0x4]]  ;;  %v38_v2 = vld [vmem:[%s491_s1] sm:$0xff]  ;;  %v356_v3 = vmov 2.0   ;;  %v357_v41 = vmov 683565275  }
  0x10   :  { %s305_s19 = sld [smem:[#allocation2 + $0x5]]  ;;  %s306_s20 = sld [smem:[#allocation2 + $0x6]]  ;;  %v358_v43 = vmov 2475754826   ;;  %v359_v45 = vmov 2131351028  }
  0x11   :  { %v42_v1 = vshrl.u32 %v41_v0, 7  ;;  %s307_s0 = sld [smem:[#allocation2 + $0x7]]  ;;  %s308_s21 = sld [smem:[#allocation2 + $0x8]]  ;;  %v360_v47 = vmov 2102212464  }
  0x12   :  { %v361_v49 = vmov 920167782   ;;  %v362_v57 = vmov 1326507024   ;;  %s301_s24 = sld [smem:[#allocation2 + $0x1]]  ;;  %s302_s25 = sld [smem:[#allocation2 + $0x2]] }
  0x13   :  { %vm43_vm0 = vcmp.lt.s32.totalorder %v42_v1, 2  ;;  %s27_s26 = sld [smem:[#allocation2]] }
  0x14   :  { %v44_v4 = vsel %vm43_vm0, 1.0, %v356_v3 }
  0x15   :  { %v45_v5 = vstv %s303_s17  ;;  %v47_v6 = vstv %s304_s18 }
  0x16   :  { %v159_v7 = vstv %s305_s19  ;;  %v46_v8 = vmul.f32 %v45_v5, %v38_v2  ;;  %v48_v9 = vmul.f32 %v47_v6, %v44_v4  ;;  %v161_v11 = vstv %s306_s20 }
  0x17   :  { %v49_v10 = vstv %s307_s0  ;;  %v160_v12 = vmul.f32 %v159_v7, %v38_v2  ;;  %v162_v13 = vmul.f32 %v161_v11, %v44_v4  ;;  %v163_v14 = vstv %s308_s21 }
  0x18   :  { %v50_v15 = vsub.f32 %v48_v9, %v49_v10  ;;  %s29_s27 = smul.f32 0.01, %s301_s24 }
  0x19   :  { %v164_v16 = vsub.f32 %v162_v13, %v163_v14  ;;  %s31_s28 = smul.f32 0.01, %s302_s25 }
  0x1a   :  { %v389_v17 = vadd.f32 %v50_v15, %v46_v8 }
  0x1b   :  { %v391_v18 = vadd.f32 %v164_v16, %v160_v12 }
  0x1c   :  { %v52_v19 = vand.u32 2147483647, %v389_v17  ;;  %v55_v20 = vand.u32 2139095040, %v389_v17  ;;  %vm54_vm15 = vcmp.lt.s32.totalorder %v389_v17, 0 }
  0x1d   :  { %v166_v21 = vand.u32 2147483647, %v391_v18  ;;  %v169_v22 = vand.u32 2139095040, %v391_v18 }
  0x1e   :  { %v56_v23 = vshrl.u32 %v55_v20, 23  ;;  %v59_v24 = vand.u32 8388607, %v52_v19  ;;  %vm452_vm0 = vcmp.le.f32.partialorder %v52_v19, 0.7853982 }
  0x1f   :  { %v170_v25 = vshrl.u32 %v169_v22, 23  ;;  %v173_v26 = vand.u32 8388607, %v166_v21 }
  0x20   :  { %v309_v27 = vadd.s32 4294967169, %v56_v23  ;;  %v60_v30 = vor.u32 8388608, %v59_v24 }
  0x21   :  { %v313_v28 = vadd.s32 4294967169, %v170_v25  ;;  %v174_v31 = vor.u32 8388608, %v173_v26 }
  0x22   :  { %v62_v29 = vadd.s32 1, %v309_v27  ;;  %v401_v37 = vshll.u32 %v60_v30, 8 }
  0x23   :  { %v176_v32 = vadd.s32 1, %v313_v28  ;;  %v403_v39 = vshll.u32 %v174_v31, 8 }
  0x24   :  { %vm63_vm1 = vcmp.gt.s32.totalorder %v62_v29, 0 }
  0x25   :  { %v64_v33 = vsel %vm63_vm1, %v62_v29, 0  ;;  %vm177_vm2 = vcmp.gt.s32.totalorder %v176_v32, 0  ;;  %vm168_vm1 = vcmp.lt.s32.totalorder %v391_v18, 0 }
  0x26   :  { %v65_v34 = vshrl.u32 %v64_v33, 5  ;;  %v66_v35 = vand.u32 31, %v64_v33  ;;  %v178_v36 = vsel %vm177_vm2, %v176_v32, 0  ;;  %vm464_vm2 = vcmp.le.f32.partialorder %v166_v21, 0.7853982 }
  0x27   :  { %v180_v38 = vand.u32 31, %v178_v36  ;;  %v405_v51 = vshrl.u32 %v178_v36, 5 }
  0x28   :  { %v67_v40 = vsub.s32 32, %v66_v35  ;;  %v69_v42 = vshll.u32 %v357_v41, %v66_v35  ;;  %v72_v44 = vshll.u32 %v358_v43, %v66_v35  ;;  %v75_v46 = vshll.u32 %v359_v45, %v66_v35 }
  0x29   :  { %v78_v48 = vshll.u32 %v360_v47, %v66_v35  ;;  %v81_v50 = vshll.u32 %v361_v49, %v66_v35  ;;  %vm84_vm3 = vcmp.lt.s32.totalorder %v65_v34, 1  ;;  %vm85_vm4 = vcmp.lt.s32.totalorder %v65_v34, 2 }
  0x2a   :  { %v68_v52 = vshrl.u32 %v357_v41, %v67_v40  ;;  %v70_v53 = vshrl.u32 %v358_v43, %v67_v40  ;;  %v73_v54 = vshrl.u32 %v359_v45, %v67_v40  ;;  %v76_v55 = vshrl.u32 %v360_v47, %v67_v40 }
  0x2b   :  { %v79_v56 = vshrl.u32 %v361_v49, %v67_v40  ;;  %v82_v58 = vshrl.u32 %v362_v57, %v67_v40  ;;  %vm87_vm5 = vcmp.lt.s32.totalorder %v65_v34, 4  ;;  %v181_v62 = vsub.s32 32, %v180_v38 }
  0x2c   :  { %v71_v59 = vor.u32 %v70_v53, %v69_v42  ;;  %v74_v60 = vor.u32 %v73_v54, %v72_v44  ;;  %v77_v61 = vor.u32 %v76_v55, %v75_v46  ;;  %vm86_vm6 = vcmp.lt.s32.totalorder %v65_v34, 3 }
  0x2d   :  { %v80_v63 = vor.u32 %v79_v56, %v78_v48  ;;  %v83_v0 = vor.u32 %v82_v58, %v81_v50  ;;  %v183_v1 = vshll.u32 %v357_v41, %v180_v38  ;;  %v186_v9 = vshll.u32 %v358_v43, %v180_v38 }
  0x2e   :  { %v88_v2 = vsel %vm84_vm3, %v68_v52, %v71_v59  ;;  %v89_v3 = vsel %vm87_vm5, %v77_v61, 2102212464  ;;  %v92_v4 = vsel %vm84_vm3, %v71_v59, %v74_v60  ;;  %v96_v5 = vsel %vm84_vm3, %v74_v60, %v77_v61 }
  0x2f   :  { %v90_v6 = vsel %vm86_vm6, %v74_v60, %v89_v3  ;;  %v93_v7 = vsel %vm87_vm5, %v80_v63, 920167782  ;;  %v97_v8 = vsel %vm87_vm5, %v83_v0, 1326507024  ;;  %v182_v12 = vshrl.u32 %v357_v41, %v181_v62 }
  0x30   :  { %v94_v10 = vsel %vm86_vm6, %v77_v61, %v93_v7  ;;  %v98_v11 = vsel %vm86_vm6, %v80_v63, %v97_v8  ;;  %v184_v13 = vshrl.u32 %v358_v43, %v181_v62  ;;  %v91_v14 = vsel %vm85_vm4, %v88_v2, %v90_v6 }
  0x31   :  { %v95_v15 = vsel %vm85_vm4, %v92_v4, %v94_v10  ;;  %v99_v16 = vsel %vm85_vm4, %v96_v5, %v98_v11  ;;  %v187_v20 = vshrl.u32 %v359_v45, %v181_v62  ;;  %v189_v28 = vshll.u32 %v359_v45, %v180_v38 }
  0x32   :  { %v414_v22 = vmul.u32.u64.low %v401_v37, %v99_v16  ;;  %v415_v23 = vmul.u32.u64.high %v401_v37, %v99_v16, %v414_v22  ;;  %v418_v24 = vmul.u32.u64.low %v401_v37, %v95_v15  ;;  %v419_v25 = vmul.u32.u64.high %v401_v37, %v95_v15, %v418_v24 }
  0x33   :  { %v185_v26 = vor.u32 %v184_v13, %v183_v1  ;;  %v188_v27 = vor.u32 %v187_v20, %v186_v9  ;;  %v190_v29 = vshrl.u32 %v360_v47, %v181_v62  ;;  %v192_v30 = vshll.u32 %v360_v47, %v180_v38 }
  0x34   :  { %v193_v31 = vshrl.u32 %v361_v49, %v181_v62  ;;  %v195_v32 = vshll.u32 %v361_v49, %v180_v38  ;;  %v196_v33 = vshrl.u32 %v362_v57, %v181_v62  ;;  %v107_v34 = vmul.u32 %v401_v37, %v91_v14 }
  0x35   :  { %v191_v35 = vor.u32 %v190_v29, %v189_v28  ;;  %vm198_vm7 = vcmp.lt.s32.totalorder %v405_v51, 1  ;;  %vm199_vm8 = vcmp.lt.s32.totalorder %v405_v51, 2  ;;  %vm109_vm9 = vc.u32 %v415_v23, %v418_v24 }
  0x36   :  { %v110_v36 = vadd.s32 1, %v419_v25  ;;  %v194_v40 = vor.u32 %v193_v31, %v192_v30  ;;  %vm200_vm10 = vcmp.lt.s32.totalorder %v405_v51, 3  ;;  %v197_v41 = vor.u32 %v196_v33, %v195_v32 }
  0x37   :  { %vm201_vm11 = vcmp.lt.s32.totalorder %v405_v51, 4  ;;  %v202_v42 = vsel %vm198_vm7, %v182_v12, %v185_v26  ;;  %v206_v38 = vsel %vm198_vm7, %v185_v26, %v188_v27  ;;  %v210_v45 = vsel %vm198_vm7, %v188_v27, %v191_v35 }
  0x38   :  { %v111_v43 = vsel %vm109_vm9, %v110_v36, %v419_v25  ;;  %v203_v37 = vsel %vm201_vm11, %v191_v35, 2102212464  ;;  %v207_v44 = vsel %vm201_vm11, %v194_v40, 920167782  ;;  %v211_v49 = vsel %vm201_vm11, %v197_v41, 1326507024 }
  0x39   :  { %v112_v46 = vadd.s32 %v111_v43, %v107_v34  ;;  %v204_v47 = vsel %vm200_vm10, %v188_v27, %v203_v37  ;;  %v208_v48 = vsel %vm200_vm10, %v191_v35, %v207_v44  ;;  %v212_v53 = vsel %vm200_vm10, %v194_v40, %v211_v49 }
  0x3a   :  { %v205_v50 = vsel %vm199_vm8, %v202_v42, %v204_v47  ;;  %v209_v52 = vsel %vm199_vm8, %v206_v38, %v208_v48  ;;  %v213_v55 = vsel %vm199_vm8, %v210_v45, %v212_v53  ;;  %v108_v10 = vadd.s32 %v418_v24, %v415_v23 }
  0x3b   :  { %v113_v54 = vadd.s32 536870912, %v112_v46  ;;  %v436_v56 = vmul.u32.u64.low %v403_v39, %v209_v52  ;;  %v437_v57 = vmul.u32.u64.high %v403_v39, %v209_v52, %v436_v56  ;;  %v221_v61 = vmul.u32 %v403_v39, %v205_v50 }
  0x3c   :  { %v440_v58 = vmul.u32.u64.low %v403_v39, %v213_v55  ;;  %v441_v59 = vmul.u32.u64.high %v403_v39, %v213_v55, %v440_v58  ;;  %vm144_vm6 = vweird.f32 %v389_v17  ;;  %vm258_vm10 = vweird.f32 %v391_v18 }
  0x3d   :  { %v114_v60 = vshrl.u32 %v113_v54, 30  ;;  %v224_v63 = vadd.s32 1, %v437_v57 }
  0x3e   :  { %vm223_vm12 = vc.u32 %v441_v59, %v436_v56  ;;  %v222_v30 = vadd.s32 %v436_v56, %v441_v59 }
  0x3f   :  { %v115_v62 = vshll.u32 %v114_v60, 30  ;;  %v225_v51 = vsel %vm223_vm12, %v224_v63, %v437_v57  ;;  %v138_v42 = vsub.s32 4, %v114_v60 }
  0x40   :  { %v226_v1 = vadd.s32 %v225_v51, %v221_v61 }
  0x41   :  { %v116_v0 = vsub.s32 %v112_v46, %v115_v62  ;;  %v139_v47 = vsel %vm54_vm15, %v138_v42, %v114_v60 }
  0x42   :  { %v227_v3 = vadd.s32 536870912, %v226_v1  ;;  %v141_v19 = vsel %vm452_vm0, 0, %v139_v47 }
  0x43   :  { %v118_v2 = vsub.s32 0, %v116_v0  ;;  %v145_v54 = vand.u32 3, %v141_v19 }
  0x44   :  { %v228_v5 = vshrl.u32 %v227_v3, 30 }
  0x45   :  { %v310_v4 = vmin.u32 %v118_v2, %v116_v0  ;;  %vm150_vm3 = vcmp.eq.s32.totalorder %v145_v54, 2  ;;  %vm147_vm4 = vcmp.eq.s32.totalorder %v145_v54, 0  ;;  %vm146_vm5 = vcmp.lt.s32.totalorder %v145_v54, 2 }
  0x46   :  { %v229_v7 = vshll.u32 %v228_v5, 30  ;;  %v252_v53 = vsub.s32 4, %v228_v5  ;;  %v155_v2 = vstv %s29_s27 }
  0x47   :  { %v120_v6 = vclz %v310_v4 }
  0x48   :  { %v230_v9 = vsub.s32 %v226_v1, %v229_v7  ;;  %v253_v57 = vsel %vm168_vm1, %v252_v53, %v228_v5  ;;  %v157_v7 = vstv %s27_s26 }
  0x49   :  { %v311_v8 = vadd.s32 4294967294, %v120_v6  ;;  %v255_v61 = vsel %vm464_vm2, 0, %v253_v57 }
  0x4a   :  { %v232_v11 = vsub.s32 0, %v230_v9  ;;  %v259_v51 = vand.u32 3, %v255_v61 }
  0x4b   :  { %vm312_vm13 = vcmp.lt.s32.totalorder %v311_v8, 0 }
  0x4c   :  { %v123_v39 = vsel %vm312_vm13, 0, %v311_v8  ;;  %v314_v15 = vmin.u32 %v232_v11, %v230_v9  ;;  %vm264_vm7 = vcmp.eq.s32.totalorder %v259_v51, 2  ;;  %vm261_vm8 = vcmp.eq.s32.totalorder %v259_v51, 0 }
  0x4d   :  { %v124_v12 = vsub.s32 32, %v123_v39  ;;  %v125_v13 = vshll.u32 %v116_v0, %v123_v39  ;;  %v128_v14 = vsub.s32 4294967266, %v123_v39  ;;  %vm260_vm9 = vcmp.lt.s32.totalorder %v259_v51, 2 }
  0x4e   :  { %v234_v22 = vclz %v314_v15 }
  0x4f   :  { %v126_v16 = vshrl.u32 %v108_v10, %v124_v12  ;;  %v129_v20 = vadd.s32 127, %v128_v14  ;;  %v39_v14 = vld [vmem:[%s491_s1 + $0x8] sm:$0xff] }
  0x50   :  { %v315_v27 = vadd.s32 4294967294, %v234_v22 }
  0x51   :  { %v127_v25 = vor.u32 %v126_v16, %v125_v13  ;;  %v130_v26 = vshll.u32 %v129_v20, 23  ;;  %v40_v16 = vld [vmem:[%s491_s1 + $0x10] sm:$0xff] }
  0x52   :  { %vm316_vm14 = vcmp.lt.s32.totalorder %v315_v27, 0 }
  0x53   :  { %v131_v28 = vor.u32 4788187, %v130_v26  ;;  %v134_v29 = vcvt.s32.f32 %v127_v25  ;;  %v237_v23 = vsel %vm316_vm14, 0, %v315_v27 }
  0x54   :  { %v238_v24 = vsub.s32 32, %v237_v23  ;;  %v239_v32 = vshll.u32 %v230_v9, %v237_v23  ;;  %v242_v33 = vsub.s32 4294967266, %v237_v23 }
  0x55   :  { %v132_v31 = vand.u32 2147483647, %v131_v28 }
  0x56   :  { %v240_v35 = vshrl.u32 %v222_v30, %v238_v24  ;;  %v243_v36 = vadd.s32 127, %v242_v33 }
  0x57   :  { %v135_v34 = vmul.f32 %v134_v29, %v132_v31 }
  0x58   :  { %v241_v38 = vor.u32 %v240_v35, %v239_v32  ;;  %v244_v43 = vshll.u32 %v243_v36, 23  ;;  %v290_v35 = vld [vmem:[%s492_s2] sm:$0x1]  ;;  %v292_v36 = vld [vmem:[%s492_s2 + $0x1] sm:$0x1] }
  0x59   :  { %v136_v41 = vxor.u32 2147483648, %v135_v34 }
  0x5a   :  { %v245_v45 = vor.u32 4788187, %v244_v43  ;;  %v248_v46 = vcvt.s32.f32 %v241_v38 }
  0x5b   :  { %v137_v37 = vsel %vm54_vm15, %v136_v41, %v135_v34 }
  0x5c   :  { %v140_v44 = vsel %vm452_vm0, %v389_v17, %v137_v37  ;;  %v246_v48 = vand.u32 2147483647, %v245_v45  ;;  %v269_v17 = vstv %s31_s28 }
  0x5d   :  { %333 = vcosq.f32 %v140_v44 }
  0x5e   :  { %335 = vsinq.f32 %v140_v44  ;;  %v249_v49 = vmul.f32 %v248_v46, %v246_v48 }
  0x60   :  { %v250_v52 = vxor.u32 2147483648, %v249_v49 }
  0x62   :  { %v251_v55 = vsel %vm168_vm1, %v250_v52, %v249_v49 }
  0x63   :  { %v254_v56 = vsel %vm464_vm2, %v391_v18, %v251_v55 }
  0x64   :  { %337 = vcosq.f32 %v254_v56 }
  0x65   :  { %339 = vsinq.f32 %v254_v56 }
  0x67   :  { %v334_v58 = vpop.eup %333 }
  0x68   :  { %v336_v59 = vpop.eup %335  ;;  %v151_v21 = vxor.u32 2147483648, %v334_v58 }
  0x69   :  { %v148_v60 = vxor.u32 2147483648, %v336_v59 }
  0x6a   :  { %v152_v62 = vsel %vm150_vm3, %v151_v21, %v336_v59 }
  0x6b   :  { %v149_v63 = vsel %vm147_vm4, %v334_v58, %v148_v60 }
  0x6c   :  { %v153_v0 = vsel %vm146_vm5, %v149_v63, %v152_v62 }
  0x6d   :  { %v154_v1 = vsel %vm144_vm6, nan, %v153_v0 }
  0x6e   :  { %v338_v3 = vpop.eup %337  ;;  %v156_v5 = vmul.f32 %v155_v2, %v154_v1 }
  0x6f   :  { %v340_v4 = vpop.eup %339  ;;  %v265_v6 = vxor.u32 2147483648, %v338_v3 }
  0x70   :  { %v262_v8 = vxor.u32 2147483648, %v340_v4  ;;  %v158_v39 = vadd.f32 %v157_v7, %v156_v5 }
  0x71   :  { %v266_v9 = vsel %vm264_vm7, %v265_v6, %v340_v4 }
  0x72   :  { %v263_v10 = vsel %vm261_vm8, %v338_v3, %v262_v8 }
  0x73   :  { %v267_v11 = vsel %vm260_vm9, %v263_v10, %v266_v9 }
  0x74   :  { %v268_v12 = vsel %vm258_vm10, nan, %v267_v11 }
  0x75   :  { %v270_v13 = vmul.f32 %v269_v17, %v268_v12 }
  0x77   :  { %v271_v15 = vadd.f32 %v270_v13, %v158_v39 }
  0x79   :  { %v272_v20 = vmul.f32 %v271_v15, %v39_v14  ;;  %v281_v22 = vmul.f32 %v271_v15, %v40_v16 }
  0x7b   :  { %273 = vadd.xlane.f32.xlu0 %v272_v20 }
  0x7f   :  { %282 = vadd.xlane.f32.xlu0 %v281_v22 }
 0x108   :  { %v274_v18 = vpop.xlane.xlu0 %273 }
 0x109   :  { %v275_v25 = vrot.slane %v274_v18, 4 }
 0x10b   :  { %v276_v26 = vadd.f32 %v275_v25, %v274_v18 }
 0x10c   :  { %v283_v27 = vpop.xlane.xlu0 %282 }
 0x10d   :  { %v277_v28 = vrot.slane %v276_v26, 2  ;;  %v284_v29 = vrot.slane %v283_v27, 4 }
 0x10f   :  { %v278_v30 = vadd.f32 %v277_v28, %v276_v26  ;;  %v285_v31 = vadd.f32 %v284_v29, %v283_v27 }
 0x111   :  { %v279_v23 = vrot.slane %v278_v30, 1  ;;  %v286_v24 = vrot.slane %v285_v31, 2 }
 0x113   :  { %v287_v32 = vadd.f32 %v286_v24, %v285_v31  ;;  %v280_v33 = vadd.f32 %v279_v23, %v278_v30 }
 0x115   :  { %v288_v34 = vrot.slane %v287_v32, 1  ;;  %v291_v41 = vmul.f32 %v290_v35, %v280_v33 }
 0x117   :  { %v289_v40 = vadd.f32 %v288_v34, %v287_v32 }
 0x119   :  { %v293_v42 = vmul.f32 %v292_v36, %v289_v40 }
 0x11b   :  { %v294_v38 = vadd.f32 %v293_v42, %v291_v41 }
 0x11d   :  { %295 = vst [vmem:[%s493_s3] sm:$0x1] %v294_v38 }
 0x11e   :  { %300 = vsyncpa [#allocation3], 1 }

</bundles_post_ra>
